<compile_context>
chip_gen: v7x
topology: tpu7x:2x2x1
jax: 0.10.0
libtpu: 0.0.40
codegen_flags: <defaults>
</compile_context>

<pallas_src>
import jax
import jax.numpy as jnp
from jax.experimental import pallas as pl
from jax.experimental.pallas import tpu as pltpu

IN_DIM = 512
HID_DIM = 256
OUT_DIM = 10
OUT_PAD = 128  # lane-dense padded logits width


def _class_predictor_kernel(
    x_ref,            # [TB, 512]  bf16
    w1_ref, c1_ref,   # [512, 512] bf16, [1, 512] f32   (BN1 folded in)
    w2_ref, c2_ref,   # [512, 256] bf16, [1, 256] f32   (BN2 folded in)
    w3_ref, c3_ref,   # [256, 128] bf16, [1, 128] f32   (zero-padded past 10)
    o_ref,            # [TB, 128]  f32
):
    x = x_ref[...]

    # fc1 (+ folded bn1) -> relu
    h = jnp.dot(x, w1_ref[...], preferred_element_type=jnp.float32) + c1_ref[...]
    h = jnp.maximum(h, 0.0)

    # fc2 (+ folded bn2) -> relu
    h = jnp.dot(h.astype(jnp.bfloat16), w2_ref[...],
                preferred_element_type=jnp.float32) + c2_ref[...]
    h = jnp.maximum(h, 0.0)

    # fc3 (logits, padded to 128 lanes)
    o_ref[...] = jnp.dot(h.astype(jnp.bfloat16), w3_ref[...],
                         preferred_element_type=jnp.float32) + c3_ref[...]


def class_predictor_small(x, params):
    """x: [B, 512] float32. params: folded / padded kernel params (see init_params)."""
    B = x.shape[0]

    # Batch tile: 256 fills the v6e/v7x MXU row dim (also fine on v5e); for
    # small batches round up to a multiple of 8 sublanes and run one tile.
    TB = 256 if B >= 256 else max(8, ((B + 7) // 8) * 8)
    B_pad = ((B + TB - 1) // TB) * TB

    x_bf = x.astype(jnp.bfloat16)
    if B_pad != B:
        x_bf = jnp.pad(x_bf, ((0, B_pad - B), (0, 0)))

    n_tiles = B_pad // TB

    def resident(shape):
        # Same block for every grid step -> stays in VMEM, DMA'd once.
        return pl.BlockSpec(shape, lambda i: (0,) * len(shape))

    in_specs = [
        pl.BlockSpec((TB, IN_DIM), lambda i: (i, 0)),          # x tile
        resident((IN_DIM, IN_DIM)),  resident((1, IN_DIM)),    # w1, c1
        resident((IN_DIM, HID_DIM)), resident((1, HID_DIM)),   # w2, c2
        resident((HID_DIM, OUT_PAD)), resident((1, OUT_PAD)),  # w3, c3
    ]
    out_spec = pl.BlockSpec((TB, OUT_PAD), lambda i: (i, 0))

    flops = 2 * B_pad * (IN_DIM * IN_DIM + IN_DIM * HID_DIM + HID_DIM * OUT_PAD)
    weight_bytes = 2 * (IN_DIM * IN_DIM + IN_DIM * HID_DIM + HID_DIM * OUT_PAD)
    bias_bytes = 4 * (IN_DIM + HID_DIM + OUT_PAD)
    act_bytes = B_pad * (IN_DIM * 2 + OUT_PAD * 4)
    cost = pl.CostEstimate(
        flops=flops,
        transcendentals=0,
        bytes_accessed=weight_bytes + bias_bytes + act_bytes,
    )

    out = pl.pallas_call(
        _class_predictor_kernel,
        out_shape=jax.ShapeDtypeStruct((B_pad, OUT_PAD), jnp.float32),
        grid=(n_tiles,),
        in_specs=in_specs,
        out_specs=out_spec,
        compiler_params=pltpu.CompilerParams(
            dimension_semantics=("parallel",),
        ),
        cost_estimate=cost,
    )(
        x_bf,
        params["w1"], params["c1"],
        params["w2"], params["c2"],
        params["w3"], params["c3"],
    )
    return out[:B, :OUT_DIM]


def init_params(key):
    """Deterministic synthetic parameters, PyTorch-shaped, then BN-folded,
    bf16-cast (weights) and lane-padded (fc3)."""
    ks = jax.random.split(key, 12)
    eps = 1e-5

    def linear(k_w, k_b, fan_in, fan_out):
        bound = 1.0 / jnp.sqrt(fan_in)
        # PyTorch stores weight as [out, in]; transpose to [in, out] for x @ W.
        w = jax.random.uniform(k_w, (fan_out, fan_in), jnp.float32, -bound, bound).T
        b = jax.random.uniform(k_b, (1, fan_out), jnp.float32, -bound, bound)
        return w, b

    def bn_fold(k_g, k_b, k_m, k_v, n):
        gamma = 1.0 + 0.1 * jax.random.normal(k_g, (1, n), jnp.float32)
        beta = 0.1 * jax.random.normal(k_b, (1, n), jnp.float32)
        running_mean = 0.1 * jax.random.normal(k_m, (1, n), jnp.float32)
        running_var = jnp.abs(1.0 + 0.1 * jax.random.normal(k_v, (1, n), jnp.float32))
        scale = gamma / jnp.sqrt(running_var + eps)  # [1, n]
        shift = beta - running_mean * scale          # [1, n]
        return scale, shift

    w1, b1 = linear(ks[0], ks[1], IN_DIM, IN_DIM)
    s1, t1 = bn_fold(ks[2], ks[3], ks[4], ks[5], IN_DIM)
    w2, b2 = linear(ks[6], ks[7], IN_DIM, HID_DIM)
    s2, t2 = bn_fold(ks[8], ks[9], ks[10], ks[11], HID_DIM)
    w3, b3 = linear(jax.random.fold_in(key, 100),
                    jax.random.fold_in(key, 101), HID_DIM, OUT_DIM)

    # Fold BN (eval mode) into the preceding linear:
    #   BN(x@W + b) = (x@W + b)*s + t = x@(W*s) + (b*s + t)
    w1f = w1 * s1                # column-wise scale
    c1 = b1 * s1 + t1
    w2f = w2 * s2
    c2 = b2 * s2 + t2

    # Pad fc3 to a lane-dense 128-wide output.
    w3p = jnp.zeros((HID_DIM, OUT_PAD), jnp.float32).at[:, :OUT_DIM].set(w3)
    c3 = jnp.zeros((1, OUT_PAD), jnp.float32).at[:, :OUT_DIM].set(b3)

    # One-time bf16 cast of weights (biases stay f32, added post-accumulation).
    return dict(
        w1=w1f.astype(jnp.bfloat16), c1=c1,
        w2=w2f.astype(jnp.bfloat16), c2=c2,
        w3=w3p.astype(jnp.bfloat16), c3=c3,
    )


def reference(x, p):
    """Pure-JAX reference using the same folded params and bf16-matmul /
    f32-accumulate arithmetic as the kernel."""
    h = jnp.dot(x.astype(jnp.bfloat16), p["w1"],
                preferred_element_type=jnp.float32) + p["c1"]
    h = jnp.maximum(h, 0.0)
    h = jnp.dot(h.astype(jnp.bfloat16), p["w2"],
                preferred_element_type=jnp.float32) + p["c2"]
    h = jnp.maximum(h, 0.0)
    out = jnp.dot(h.astype(jnp.bfloat16), p["w3"],
                  preferred_element_type=jnp.float32) + p["c3"]
    return out[:, :OUT_DIM]


if __name__ == "__main__":
    key = jax.random.PRNGKey(0)
    k_x, k_p = jax.random.split(key)
    params = init_params(k_p)

    # Small batch (single tile, sublane-padded path).
    B = 8
    x = jax.random.normal(k_x, (B, IN_DIM), jnp.float32)
    out = jax.block_until_ready(class_predictor_small(x, params))
    ref = reference(x, params)
    assert out.shape == (B, OUT_DIM), out.shape
    assert jnp.allclose(out, ref, atol=1e-3, rtol=1e-3), "mismatch vs reference (B=8)"

    # Larger batch (multi-tile, batch-padded path) to exercise the grid.
    B2 = 300
    x2 = jax.random.normal(jax.random.fold_in(k_x, 1), (B2, IN_DIM), jnp.float32)
    out2 = jax.block_until_ready(class_predictor_small(x2, params))
    ref2 = reference(x2, params)
    assert out2.shape == (B2, OUT_DIM), out2.shape
    assert jnp.allclose(out2, ref2, atol=1e-3, rtol=1e-3), "mismatch vs reference (B=300)"

    # TODO(synk): grad_reverse (reverse=True path) is a backward-pass-only op
    # (identity in forward); not represented in this forward kernel.
    print("KERNEL_OK")
</pallas_src>

<mosaic_0001>
module attributes {stable_mosaic.version = 11 : i64} {
  func.func @_class_predictor_kernel(%arg0: i32, %arg1: memref<8x512xbf16, #tpu.memory_space<vmem>>, %arg2: memref<512x512xbf16, #tpu.memory_space<vmem>>, %arg3: memref<1x512xf32, #tpu.memory_space<vmem>>, %arg4: memref<512x256xbf16, #tpu.memory_space<vmem>>, %arg5: memref<1x256xf32, #tpu.memory_space<vmem>>, %arg6: memref<256x128xbf16, #tpu.memory_space<vmem>>, %arg7: memref<1x128xf32, #tpu.memory_space<vmem>>, %arg8: memref<8x128xf32, #tpu.memory_space<vmem>>) attributes {dimension_semantics = [#tpu.dimension_semantics<parallel>], iteration_bounds = array<i64: 1>, scalar_prefetch = 0 : i64, scratch_operands = 0 : i64, tpu.core_type = #tpu.core_type<tc>, window_params = [{transform_indices = @transform_0, window_bounds = array<i64: 8, 512>}, {pipeline_mode = #tpu.pipeline_mode<synchronous>, transform_indices = @transform_1, window_bounds = array<i64: 512, 512>}, {pipeline_mode = #tpu.pipeline_mode<synchronous>, transform_indices = @transform_2, window_bounds = array<i64: 1, 512>}, {pipeline_mode = #tpu.pipeline_mode<synchronous>, transform_indices = @transform_3, window_bounds = array<i64: 512, 256>}, {pipeline_mode = #tpu.pipeline_mode<synchronous>, transform_indices = @transform_4, window_bounds = array<i64: 1, 256>}, {pipeline_mode = #tpu.pipeline_mode<synchronous>, transform_indices = @transform_5, window_bounds = array<i64: 256, 128>}, {pipeline_mode = #tpu.pipeline_mode<synchronous>, transform_indices = @transform_6, window_bounds = array<i64: 1, 128>}, {transform_indices = @transform_7, window_bounds = array<i64: 8, 128>}]} {
    %c0 = arith.constant 0 : index
    %c0_0 = arith.constant 0 : index
    %0 = vector.load %arg1[%c0, %c0_0] : memref<8x512xbf16, #tpu.memory_space<vmem>>, vector<8x512xbf16>
    %c0_1 = arith.constant 0 : index
    %c0_2 = arith.constant 0 : index
    %1 = vector.load %arg2[%c0_1, %c0_2] : memref<512x512xbf16, #tpu.memory_space<vmem>>, vector<512x512xbf16>
    %cst = arith.constant dense<0.000000e+00> : vector<8x512xf32>
    %2 = tpu.matmul %0, %1, %cst {dimension_numbers = #tpu.dot_dimension_numbers<[1], [0], [0], [1], [0, 0, 1, 1], [], []>} : vector<8x512xbf16>, vector<512x512xbf16>, vector<8x512xf32> -> vector<8x512xf32>
    %c0_3 = arith.constant 0 : index
    %c0_4 = arith.constant 0 : index
    %3 = vector.load %arg3[%c0_3, %c0_4] : memref<1x512xf32, #tpu.memory_space<vmem>>, vector<1x512xf32>
    %4 = vector.broadcast %3 : vector<1x512xf32> to vector<8x512xf32>
    %5 = arith.addf %2, %4 : vector<8x512xf32>
    %cst_5 = arith.constant 0.000000e+00 : f32
    %6 = vector.broadcast %cst_5 : f32 to vector<8x512xf32>
    %7 = arith.maximumf %5, %6 : vector<8x512xf32>
    %8 = arith.truncf %7 : vector<8x512xf32> to vector<8x512xbf16>
    %c0_6 = arith.constant 0 : index
    %c0_7 = arith.constant 0 : index
    %9 = vector.load %arg4[%c0_6, %c0_7] : memref<512x256xbf16, #tpu.memory_space<vmem>>, vector<512x256xbf16>
    %cst_8 = arith.constant dense<0.000000e+00> : vector<8x256xf32>
    %10 = tpu.matmul %8, %9, %cst_8 {dimension_numbers = #tpu.dot_dimension_numbers<[1], [0], [0], [1], [0, 0, 1, 1], [], []>} : vector<8x512xbf16>, vector<512x256xbf16>, vector<8x256xf32> -> vector<8x256xf32>
    %c0_9 = arith.constant 0 : index
    %c0_10 = arith.constant 0 : index
    %11 = vector.load %arg5[%c0_9, %c0_10] : memref<1x256xf32, #tpu.memory_space<vmem>>, vector<1x256xf32>
    %12 = vector.broadcast %11 : vector<1x256xf32> to vector<8x256xf32>
    %13 = arith.addf %10, %12 : vector<8x256xf32>
    %cst_11 = arith.constant 0.000000e+00 : f32
    %14 = vector.broadcast %cst_11 : f32 to vector<8x256xf32>
    %15 = arith.maximumf %13, %14 : vector<8x256xf32>
    %16 = arith.truncf %15 : vector<8x256xf32> to vector<8x256xbf16>
    %c0_12 = arith.constant 0 : index
    %c0_13 = arith.constant 0 : index
    %17 = vector.load %arg6[%c0_12, %c0_13] : memref<256x128xbf16, #tpu.memory_space<vmem>>, vector<256x128xbf16>
    %cst_14 = arith.constant dense<0.000000e+00> : vector<8x128xf32>
    %18 = tpu.matmul %16, %17, %cst_14 {dimension_numbers = #tpu.dot_dimension_numbers<[1], [0], [0], [1], [0, 0, 1, 1], [], []>} : vector<8x256xbf16>, vector<256x128xbf16>, vector<8x128xf32> -> vector<8x128xf32>
    %c0_15 = arith.constant 0 : index
    %c0_16 = arith.constant 0 : index
    %19 = vector.load %arg7[%c0_15, %c0_16] : memref<1x128xf32, #tpu.memory_space<vmem>>, vector<1x128xf32>
    %20 = vector.broadcast %19 : vector<1x128xf32> to vector<8x128xf32>
    %21 = arith.addf %18, %20 : vector<8x128xf32>
    %c0_17 = arith.constant 0 : index
    %c0_18 = arith.constant 0 : index
    %22 = vector.load %arg8[%c0_17, %c0_18] : memref<8x128xf32, #tpu.memory_space<vmem>>, vector<8x128xf32>
    tpu.vector_store %arg8[%c0_17, %c0_18], %21 {strides = array<i32>} : memref<8x128xf32, #tpu.memory_space<vmem>>, vector<8x128xf32>,
    return
  }
  func.func @transform_0(%arg0: i32) -> (i32, i32) {
    %c0_i32 = arith.constant 0 : i32
    %c0_i32_0 = arith.constant 0 : i32
    return %arg0, %c0_i32 : i32, i32
  }
  func.func @transform_1(%arg0: i32) -> (i32, i32) {
    %c0_i32 = arith.constant 0 : i32
    %c0_i32_0 = arith.constant 0 : i32
    %c0_i32_1 = arith.constant 0 : i32
    return %c0_i32, %c0_i32_0 : i32, i32
  }
  func.func @transform_2(%arg0: i32) -> (i32, i32) {
    %c0_i32 = arith.constant 0 : i32
    %c0_i32_0 = arith.constant 0 : i32
    %c0_i32_1 = arith.constant 0 : i32
    return %c0_i32, %c0_i32_0 : i32, i32
  }
  func.func @transform_3(%arg0: i32) -> (i32, i32) {
    %c0_i32 = arith.constant 0 : i32
    %c0_i32_0 = arith.constant 0 : i32
    %c0_i32_1 = arith.constant 0 : i32
    return %c0_i32, %c0_i32_0 : i32, i32
  }
  func.func @transform_4(%arg0: i32) -> (i32, i32) {
    %c0_i32 = arith.constant 0 : i32
    %c0_i32_0 = arith.constant 0 : i32
    %c0_i32_1 = arith.constant 0 : i32
    return %c0_i32, %c0_i32_0 : i32, i32
  }
  func.func @transform_5(%arg0: i32) -> (i32, i32) {
    %c0_i32 = arith.constant 0 : i32
    %c0_i32_0 = arith.constant 0 : i32
    %c0_i32_1 = arith.constant 0 : i32
    return %c0_i32, %c0_i32_0 : i32, i32
  }
  func.func @transform_6(%arg0: i32) -> (i32, i32) {
    %c0_i32 = arith.constant 0 : i32
    %c0_i32_0 = arith.constant 0 : i32
    %c0_i32_1 = arith.constant 0 : i32
    return %c0_i32, %c0_i32_0 : i32, i32
  }
  func.func @transform_7(%arg0: i32) -> (i32, i32) {
    %c0_i32 = arith.constant 0 : i32
    %c0_i32_0 = arith.constant 0 : i32
    return %arg0, %c0_i32 : i32, i32
  }
}

</mosaic_0001>

<bundles_post_ra>
// kernel: tpu_custom_call.1
= control target key start
LH: loop header
LB: loop body
LE: loop exit
PB: predicated region body
PF: predicated region fallthrough
CT: control target
= control target key end

     0   :  { %12 = vsyncpa [#allocation3], 0  ;;  %s2574_s0 = inlined_call_operand.hbm [shape: bf16[8,512], index: 0, kind: input, shape index: {}]   ;;  %s2575_s1 = inlined_call_operand.hbm [shape: bf16[512,512], index: 1, kind: input, shape index: {}]   ;;  %s2576_s2 = inlined_call_operand.vmem [shape: f32[1,512], index: 2, kind: input, shape index: {}]   ;;  %s2577_s3 = inlined_call_operand.hbm [shape: bf16[512,256], index: 3, kind: input, shape index: {}]   ;;  %s2578_s4 = inlined_call_operand.vmem [shape: f32[1,256], index: 4, kind: input, shape index: {}]   ;;  %s2579_s5 = inlined_call_operand.hbm [shape: bf16[256,128], index: 5, kind: input, shape index: {}]   ;;  %s2580_s6 = inlined_call_operand.vmem [shape: f32[1,128], index: 6, kind: input, shape index: {}]   ;;  %s2581_s7 = inlined_call_operand.hbm [shape: f32[8,128], index: 7, kind: output, shape index: {}]  }
   0x1   :  { %13 = vsyncpa [#allocation6], 0 }
   0x2   :  { %14 = vsyncpa [#allocation9], 0 }
   0x3   :  { %15 = vsyncpa [#allocation4], 0  ;;  %s2422_s24 = smov [#allocation5]   ;;  %s2304_s28 = scalar_lea.hbm %s2575_s1, 16384 }
   0x4   :  { %s31_s25 = sshll.u32 %s2422_s24, 4  ;;  %p2305_p0 = scmp.ne.s32.totalorder %s2575_s1, %s2304_s28  ;;  %s32_s25 = int_to_ptr.vmem [resolvable:$true] %s31_s25 }
   0x5   :  { %p2308_p1 = scmp.lt.u32.totalorder %s2304_s28, %s2575_s1 }
   0x7   :  { %p2310_p2 = pnand %p2308_p1, %p2305_p0 }
   0x9   :  { %2313 = shalt.err (!%p2310_p2)
}
   0xa   :  { %s2314_s10 = scalar_lea.vmem %s32_s25, 16384  ;;  %p2319_p4 = scmp.lt.s32.totalorder %s32_s25, %s32_s25 }
   0xb   :  { %p2315_p3 = scmp.ne.s32.totalorder %s32_s25, %s2314_s10  ;;  %p2320_p5 = scmp.lt.s32.totalorder %s2314_s10, %s2314_s10 }
   0xd   :  { %p2321_p6 = por %p2320_p5, %p2319_p4 }
   0xf   :  { %p2322_p7 = pnand %p2321_p6, %p2315_p3 }
  0x11   :  { %2325 = shalt.err (!%p2322_p7)
}
  0x12   :  { %s2423_s11 = smov 256   ;;  %s2424_s12 = smov 16  }
  0x13   :  { %37 = dma.hbm_to_vmem [thread:$0]  %s2575_s1, 16384, %s32_s25, [#allocation6], %s2423_s11, %s2423_s11, %s2424_s12  }
  0x14   :  { %s2425_s15 = smov [#allocation2]   ;;  %s2426_s17 = smov [#allocation7]  }
  0x15   :  { %s22_s16 = sshll.u32 %s2425_s15, 4  ;;  %s45_s18 = sshll.u32 %s2426_s17, 4  ;;  %s23_s16 = int_to_ptr.vmem [resolvable:$true] %s22_s16  ;;  %s46_s18 = int_to_ptr.vmem [resolvable:$true] %s45_s18 }
  0x16   :  { %s2326_s21 = scalar_lea.hbm %s2574_s0, 256 }
  0x17   :  { %p2327_p8 = scmp.ne.s32.totalorder %s2574_s0, %s2326_s21  ;;  %p2330_p9 = scmp.lt.u32.totalorder %s2326_s21, %s2574_s0 }
  0x19   :  { %p2332_p10 = pnand %p2330_p9, %p2327_p8 }
  0x1b   :  { %2335 = shalt.err (!%p2332_p10)
}
  0x1c   :  { %s2336_s1 = scalar_lea.vmem %s23_s16, 256  ;;  %p2341_p12 = scmp.lt.s32.totalorder %s23_s16, %s23_s16 }
  0x1d   :  { %p2337_p11 = scmp.ne.s32.totalorder %s23_s16, %s2336_s1  ;;  %p2342_p13 = scmp.lt.s32.totalorder %s2336_s1, %s2336_s1 }
  0x1f   :  { %p2343_p0 = por %p2342_p13, %p2341_p12 }
  0x21   :  { %p2344_p1 = pnand %p2343_p0, %p2337_p11 }
  0x23   :  { %2347 = shalt.err (!%p2344_p1)
}
  0x24   :  { %25 = dma.hbm_to_vmem [thread:$0]  %s2574_s0, 256, %s23_s16, [#allocation3]  }
  0x25   :  { %s2348_s30 = scalar_lea.hbm %s2577_s3, 8192 }
  0x26   :  { %p2349_p2 = scmp.ne.s32.totalorder %s2577_s3, %s2348_s30  ;;  %p2352_p3 = scmp.lt.u32.totalorder %s2348_s30, %s2577_s3 }
  0x28   :  { %p2354_p4 = pnand %p2352_p3, %p2349_p2 }
  0x2a   :  { %2357 = shalt.err (!%p2354_p4)
}
  0x2b   :  { %s2358_s12 = scalar_lea.vmem %s46_s18, 8192  ;;  %p2363_p6 = scmp.lt.s32.totalorder %s46_s18, %s46_s18 }
  0x2c   :  { %p2359_p5 = scmp.ne.s32.totalorder %s46_s18, %s2358_s12  ;;  %p2364_p7 = scmp.lt.s32.totalorder %s2358_s12, %s2358_s12 }
  0x2e   :  { %p2365_p8 = por %p2364_p7, %p2363_p6 }
  0x30   :  { %p2366_p9 = pnand %p2365_p8, %p2359_p5 }
  0x32   :  { %2369 = shalt.err (!%p2366_p9)
}
  0x33   :  { %s2427_s0 = smov 128   ;;  %s2428_s13 = smov 8  }
  0x34   :  { %51 = dma.hbm_to_vmem [thread:$0]  %s2577_s3, 8192, %s46_s18, [#allocation6], %s2427_s0, %s2427_s0, %s2428_s13  }
  0x35   :  { %s2429_s16 = smov [#allocation8]   ;;  %s2370_s21 = scalar_lea.hbm %s2579_s5, 2048 }
  0x36   :  { %s59_s17 = sshll.u32 %s2429_s16, 4  ;;  %p2371_p10 = scmp.ne.s32.totalorder %s2579_s5, %s2370_s21  ;;  %s60_s17 = int_to_ptr.vmem [resolvable:$true] %s59_s17 }
  0x37   :  { %p2374_p11 = scmp.lt.u32.totalorder %s2370_s21, %s2579_s5 }
  0x39   :  { %p2376_p12 = pnand %p2374_p11, %p2371_p10 }
  0x3b   :  { %2379 = shalt.err (!%p2376_p12)
}
  0x3c   :  { %s2380_s1 = scalar_lea.vmem %s60_s17, 2048  ;;  %p2385_p0 = scmp.lt.s32.totalorder %s60_s17, %s60_s17 }
  0x3d   :  { %p2381_p13 = scmp.ne.s32.totalorder %s60_s17, %s2380_s1  ;;  %p2386_p1 = scmp.lt.s32.totalorder %s2380_s1, %s2380_s1 }
  0x3f   :  { %p2387_p2 = por %p2386_p1, %p2385_p0 }
  0x41   :  { %p2388_p3 = pnand %p2387_p2, %p2381_p13 }
  0x43   :  { %2391 = shalt.err (!%p2388_p3)
}
  0x44   :  { %s2430_s3 = smov 64   ;;  %s2431_s18 = smov 4  }
  0x45   :  { %65 = dma.hbm_to_vmem [thread:$0]  %s2579_s5, 2048, %s60_s17, [#allocation9], %s2430_s3, %s2430_s3, %s2431_s18  }
  0x46   :  { %2414 = dma.done.wait [#allocation3], 256  }
  0x47   :  { %2415 = vsyncadd [#allocation3], 4294967040 }
  0x48   :  { %2416 = dma.done.wait [#allocation6], 24576  }
  0x49   :  { %2417 = vsyncadd [#allocation6], 4294942720 }
  0x4a   :  { %2418 = dma.done.wait [#allocation9], 2048  }
  0x4b   :  { %2419 = vsyncadd [#allocation9], 4294965248  ;;  %v1996_v0 = vld [vmem:[#allocation5 + $0x4] ss:$16 sps:$4 sm:$0xff]   ;;  %v1998_v1 = vld [vmem:[#allocation5] ss:$16 sps:$4 sm:$0xff]  }
  0x4c   :  { %887 = vmatprep.subr.bf16.mxu1 %v1996_v0  ;;  %v1999_v2 = vld [vmem:[#allocation5 + $0x204] ss:$16 sps:$4 sm:$0xff]   ;;  %v2001_v3 = vld [vmem:[#allocation5 + $0x200] ss:$16 sps:$4 sm:$0xff]   ;;  %v82_v50 = vld [vmem:[#allocation2 + $0x8] sm:$0xff]  ;;  %s2432_s8 = smov [#allocation10]  }
  0x4d   :  { %888 = vmatpush1.bf16.msra.mxu1 %v1998_v1  ;;  %v2002_v4 = vld [vmem:[#allocation5 + $0x24] ss:$16 sps:$4 sm:$0xff]   ;;  %v2004_v5 = vld [vmem:[#allocation5 + $0x20] ss:$16 sps:$4 sm:$0xff]   ;;  %928 = vmatprep.subr.bf16.mxu0 %v1999_v2  ;;  %v2521_v52 = vcombine.high %v82_v50, %v82_v50  ;;  %s1723_s9 = sshll.u32 %s2432_s8, 4  ;;  %s1724_s9 = int_to_ptr.vmem [resolvable:$true] %s1723_s9 }
  0x4e   :  { %v2005_v6 = vld [vmem:[#allocation5 + $0x224] ss:$16 sps:$4 sm:$0xff]   ;;  %929 = vmatpush1.bf16.msra.mxu0 %v2001_v3  ;;  %889 = vmatprep.subr.bf16.mxu1 %v2002_v4  ;;  %v2007_v7 = vld [vmem:[#allocation5 + $0x220] ss:$16 sps:$4 sm:$0xff]   ;;  %v2096_v3 = vld [vmem:[#allocation5 + $0xc] ss:$16 sps:$4 sm:$0xff]   ;;  %p2397_p5 = scmp.lt.s32.totalorder %s1724_s9, %s1724_s9 }
  0x4f   :  { %930 = vmatprep.subr.bf16.mxu0 %v2005_v6  ;;  %v2008_v8 = vld [vmem:[#allocation5 + $0x44] ss:$16 sps:$4 sm:$0xff]   ;;  %v2010_v9 = vld [vmem:[#allocation5 + $0x40] ss:$16 sps:$4 sm:$0xff]   ;;  %960 = vmatprep.mubr.bf16.mxu0 %v2521_v52  ;;  %v2094_v6 = vld [vmem:[#allocation5 + $0x8] ss:$16 sps:$4 sm:$0xff]  }
  0x50   :  { %v2011_v10 = vld [vmem:[#allocation5 + $0x244] ss:$16 sps:$4 sm:$0xff]   ;;  %v2013_v12 = vld [vmem:[#allocation5 + $0x240] ss:$16 sps:$4 sm:$0xff]   ;;  %s2392_s10 = scalar_lea.vmem %s1724_s9, 128 }
  0x51   :  { %890 = vmatpush1.bf16.msra.mxu1 %v2004_v5  ;;  %v2014_v11 = vld [vmem:[#allocation5 + $0x64] ss:$16 sps:$4 sm:$0xff]   ;;  %v2016_v14 = vld [vmem:[#allocation5 + $0x60] ss:$16 sps:$4 sm:$0xff]   ;;  %p2393_p4 = scmp.ne.s32.totalorder %s1724_s9, %s2392_s10  ;;  %p2398_p6 = scmp.lt.s32.totalorder %s2392_s10, %s2392_s10 }
  0x52   :  { %891 = vmatprep.subr.bf16.mxu1 %v2008_v8  ;;  %931 = vmatpush1.bf16.msra.mxu0 %v2007_v7  ;;  %v2017_v13 = vld [vmem:[#allocation5 + $0x264] ss:$16 sps:$4 sm:$0xff]   ;;  %v2019_v16 = vld [vmem:[#allocation5 + $0x260] ss:$16 sps:$4 sm:$0xff]   ;;  %v2526_v7 = vcombine.low %v82_v50, %v82_v50  ;;  %v2101_v8 = vld [vmem:[#allocation5 + $0x2c] ss:$16 sps:$4 sm:$0xff]  }
  0x53   :  { %932 = vmatprep.subr.bf16.mxu0 %v2011_v10  ;;  %v2020_v15 = vld [vmem:[#allocation5 + $0x84] ss:$16 sps:$4 sm:$0xff]   ;;  %v2022_v18 = vld [vmem:[#allocation5 + $0x80] ss:$16 sps:$4 sm:$0xff]   ;;  %v2104_v10 = vld [vmem:[#allocation5 + $0x4c] ss:$16 sps:$4 sm:$0xff]   ;;  %p2399_p7 = por %p2398_p6, %p2397_p5 }
  0x54   :  { %v2023_v17 = vld [vmem:[#allocation5 + $0x284] ss:$16 sps:$4 sm:$0xff]   ;;  %v2025_v20 = vld [vmem:[#allocation5 + $0x280] ss:$16 sps:$4 sm:$0xff]  }
  0x55   :  { %892 = vmatpush1.bf16.msra.mxu1 %v2010_v9  ;;  %v2026_v19 = vld [vmem:[#allocation5 + $0xa4] ss:$16 sps:$4 sm:$0xff]   ;;  %v2028_v22 = vld [vmem:[#allocation5 + $0xa0] ss:$16 sps:$4 sm:$0xff]   ;;  %v2099_v9 = vld [vmem:[#allocation5 + $0x28] ss:$16 sps:$4 sm:$0xff]   ;;  %p2400_p8 = pnand %p2399_p7, %p2393_p4 }
  0x56   :  { %893 = vmatprep.subr.bf16.mxu1 %v2014_v11  ;;  %933 = vmatpush1.bf16.msra.mxu0 %v2013_v12  ;;  %v2029_v21 = vld [vmem:[#allocation5 + $0x2a4] ss:$16 sps:$4 sm:$0xff]   ;;  %v2031_v24 = vld [vmem:[#allocation5 + $0x2a0] ss:$16 sps:$4 sm:$0xff]   ;;  %v2102_v11 = vld [vmem:[#allocation5 + $0x48] ss:$16 sps:$4 sm:$0xff]  }
  0x57   :  { %934 = vmatprep.subr.bf16.mxu0 %v2017_v13  ;;  %v2032_v23 = vld [vmem:[#allocation5 + $0xc4] ss:$16 sps:$4 sm:$0xff]   ;;  %v2034_v26 = vld [vmem:[#allocation5 + $0xc0] ss:$16 sps:$4 sm:$0xff]   ;;  %v2107_v12 = vld [vmem:[#allocation5 + $0x6c] ss:$16 sps:$4 sm:$0xff]  }
  0x58   :  { %v2035_v25 = vld [vmem:[#allocation5 + $0x2c4] ss:$16 sps:$4 sm:$0xff]   ;;  %v2037_v28 = vld [vmem:[#allocation5 + $0x2c0] ss:$16 sps:$4 sm:$0xff]   ;;  %v2105_v13 = vld [vmem:[#allocation5 + $0x68] ss:$16 sps:$4 sm:$0xff]  }
  0x59   :  { %894 = vmatpush1.bf16.msra.mxu1 %v2016_v14  ;;  %v2038_v27 = vld [vmem:[#allocation5 + $0xe4] ss:$16 sps:$4 sm:$0xff]   ;;  %v2040_v30 = vld [vmem:[#allocation5 + $0xe0] ss:$16 sps:$4 sm:$0xff]   ;;  %v2110_v14 = vld [vmem:[#allocation5 + $0x8c] ss:$16 sps:$4 sm:$0xff]  }
  0x5a   :  { %895 = vmatprep.subr.bf16.mxu1 %v2020_v15  ;;  %935 = vmatpush1.bf16.msra.mxu0 %v2019_v16  ;;  %v2041_v29 = vld [vmem:[#allocation5 + $0x2e4] ss:$16 sps:$4 sm:$0xff]   ;;  %v2043_v32 = vld [vmem:[#allocation5 + $0x2e0] ss:$16 sps:$4 sm:$0xff]   ;;  %v2108_v15 = vld [vmem:[#allocation5 + $0x88] ss:$16 sps:$4 sm:$0xff]  }
  0x5b   :  { %936 = vmatprep.subr.bf16.mxu0 %v2023_v17  ;;  %v2044_v31 = vld [vmem:[#allocation5 + $0x104] ss:$16 sps:$4 sm:$0xff]   ;;  %v2046_v34 = vld [vmem:[#allocation5 + $0x100] ss:$16 sps:$4 sm:$0xff]   ;;  %v2113_v16 = vld [vmem:[#allocation5 + $0xac] ss:$16 sps:$4 sm:$0xff]  }
  0x5c   :  { %v2047_v33 = vld [vmem:[#allocation5 + $0x304] ss:$16 sps:$4 sm:$0xff]   ;;  %v2049_v36 = vld [vmem:[#allocation5 + $0x300] ss:$16 sps:$4 sm:$0xff]   ;;  %v2111_v17 = vld [vmem:[#allocation5 + $0xa8] ss:$16 sps:$4 sm:$0xff]  }
  0x5d   :  { %896 = vmatpush1.bf16.msra.mxu1 %v2022_v18  ;;  %v2050_v35 = vld [vmem:[#allocation5 + $0x124] ss:$16 sps:$4 sm:$0xff]   ;;  %v2052_v38 = vld [vmem:[#allocation5 + $0x120] ss:$16 sps:$4 sm:$0xff]   ;;  %v2116_v18 = vld [vmem:[#allocation5 + $0xcc] ss:$16 sps:$4 sm:$0xff]  }
  0x5e   :  { %897 = vmatprep.subr.bf16.mxu1 %v2026_v19  ;;  %937 = vmatpush1.bf16.msra.mxu0 %v2025_v20  ;;  %v2053_v37 = vld [vmem:[#allocation5 + $0x324] ss:$16 sps:$4 sm:$0xff]   ;;  %v2055_v40 = vld [vmem:[#allocation5 + $0x320] ss:$16 sps:$4 sm:$0xff]   ;;  %v2114_v19 = vld [vmem:[#allocation5 + $0xc8] ss:$16 sps:$4 sm:$0xff]  }
  0x5f   :  { %938 = vmatprep.subr.bf16.mxu0 %v2029_v21  ;;  %v2056_v39 = vld [vmem:[#allocation5 + $0x144] ss:$16 sps:$4 sm:$0xff]   ;;  %v2058_v42 = vld [vmem:[#allocation5 + $0x140] ss:$16 sps:$4 sm:$0xff]  }
  0x60   :  { %v2059_v41 = vld [vmem:[#allocation5 + $0x344] ss:$16 sps:$4 sm:$0xff]   ;;  %v2061_v44 = vld [vmem:[#allocation5 + $0x340] ss:$16 sps:$4 sm:$0xff]  }
  0x61   :  { %898 = vmatpush1.bf16.msra.mxu1 %v2028_v22  ;;  %v2062_v43 = vld [vmem:[#allocation5 + $0x164] ss:$16 sps:$4 sm:$0xff]   ;;  %v2064_v47 = vld [vmem:[#allocation5 + $0x160] ss:$16 sps:$4 sm:$0xff]   ;;  %v2119_v22 = vld [vmem:[#allocation5 + $0xec] ss:$16 sps:$4 sm:$0xff]  }
  0x62   :  { %899 = vmatprep.subr.bf16.mxu1 %v2032_v23  ;;  %939 = vmatpush1.bf16.msra.mxu0 %v2031_v24  ;;  %v2065_v45 = vld [vmem:[#allocation5 + $0x364] ss:$16 sps:$4 sm:$0xff]   ;;  %v2067_v51 = vld [vmem:[#allocation5 + $0x360] ss:$16 sps:$4 sm:$0xff]   ;;  %v2117_v24 = vld [vmem:[#allocation5 + $0xe8] ss:$16 sps:$4 sm:$0xff]  }
  0x63   :  { %940 = vmatprep.subr.bf16.mxu0 %v2035_v25  ;;  %v81_v46 = vld [vmem:[#allocation2] sm:$0xff]  ;;  %v2192_v20 = vld [vmem:[#allocation7] ss:$8 sps:$4 sm:$0xff]   ;;  %v2194_v21 = vld [vmem:[#allocation7 + $0x4] ss:$8 sps:$4 sm:$0xff]  }
  0x64   :  { %v1735_v48 = vcombine.high %v81_v46, %v81_v46  ;;  %v2068_v49 = vld [vmem:[#allocation5 + $0x184] ss:$16 sps:$4 sm:$0xff]   ;;  %v2070_v54 = vld [vmem:[#allocation5 + $0x180] ss:$16 sps:$4 sm:$0xff]   ;;  %v2524_v5 = vcombine.low %v81_v46, %v81_v46 }
  0x65   :  { %900 = vmatpush1.bf16.msra.mxu1 %v2034_v26  ;;  %v2071_v53 = vld [vmem:[#allocation5 + $0x384] ss:$16 sps:$4 sm:$0xff]   ;;  %v2073_v56 = vld [vmem:[#allocation5 + $0x380] ss:$16 sps:$4 sm:$0xff]  }
  0x66   :  { %901 = vmatprep.subr.bf16.mxu1 %v2038_v27  ;;  %941 = vmatpush1.bf16.msra.mxu0 %v2037_v28  ;;  %v2074_v55 = vld [vmem:[#allocation5 + $0x1a4] ss:$16 sps:$4 sm:$0xff]   ;;  %v2076_v58 = vld [vmem:[#allocation5 + $0x1a0] ss:$16 sps:$4 sm:$0xff]   ;;  %v2122_v27 = vld [vmem:[#allocation5 + $0x10c] ss:$16 sps:$4 sm:$0xff]  }
  0x67   :  { %942 = vmatprep.subr.bf16.mxu0 %v2041_v29  ;;  %919 = vmatprep.mubr.bf16.mxu1 %v1735_v48  ;;  %v2077_v57 = vld [vmem:[#allocation5 + $0x3a4] ss:$16 sps:$4 sm:$0xff]   ;;  %v2079_v60 = vld [vmem:[#allocation5 + $0x3a0] ss:$16 sps:$4 sm:$0xff]   ;;  %v2120_v28 = vld [vmem:[#allocation5 + $0x108] ss:$16 sps:$4 sm:$0xff]  }
  0x68   :  { %v2080_v59 = vld [vmem:[#allocation5 + $0x1c4] ss:$16 sps:$4 sm:$0xff]   ;;  %v2082_v62 = vld [vmem:[#allocation5 + $0x1c0] ss:$16 sps:$4 sm:$0xff]  }
  0x69   :  { %902 = vmatpush1.bf16.msra.mxu1 %v2040_v30  ;;  %v2083_v61 = vld [vmem:[#allocation5 + $0x3c4] ss:$16 sps:$4 sm:$0xff]   ;;  %v2085_v0 = vld [vmem:[#allocation5 + $0x3c0] ss:$16 sps:$4 sm:$0xff]  }
  0x6a   :  { %903 = vmatprep.subr.bf16.mxu1 %v2044_v31  ;;  %943 = vmatpush1.bf16.msra.mxu0 %v2043_v32  ;;  %v2086_v63 = vld [vmem:[#allocation5 + $0x1e4] ss:$16 sps:$4 sm:$0xff]   ;;  %v2088_v2 = vld [vmem:[#allocation5 + $0x1e0] ss:$16 sps:$4 sm:$0xff]   ;;  %v2125_v31 = vld [vmem:[#allocation5 + $0x12c] ss:$16 sps:$4 sm:$0xff]  }
  0x6b   :  { %944 = vmatprep.subr.bf16.mxu0 %v2047_v33  ;;  %v2089_v1 = vld [vmem:[#allocation5 + $0x3e4] ss:$16 sps:$4 sm:$0xff]   ;;  %v2093_v4 = vld [vmem:[#allocation5 + $0x3e0] ss:$16 sps:$4 sm:$0xff]   ;;  %v2123_v32 = vld [vmem:[#allocation5 + $0x128] ss:$16 sps:$4 sm:$0xff]  }
  0x6c   :  { %v2197_v23 = vld [vmem:[#allocation7 + $0x14] ss:$8 sps:$4 sm:$0xff]   ;;  %v2195_v25 = vld [vmem:[#allocation7 + $0x10] ss:$8 sps:$4 sm:$0xff]   ;;  %v2200_v26 = vld [vmem:[#allocation7 + $0x24] ss:$8 sps:$4 sm:$0xff]  }
  0x6d   :  { %904 = vmatpush1.bf16.msra.mxu1 %v2046_v34  ;;  %v2198_v29 = vld [vmem:[#allocation7 + $0x20] ss:$8 sps:$4 sm:$0xff]   ;;  %v2203_v30 = vld [vmem:[#allocation7 + $0x34] ss:$8 sps:$4 sm:$0xff]   ;;  %v2201_v33 = vld [vmem:[#allocation7 + $0x30] ss:$8 sps:$4 sm:$0xff]  }
  0x6e   :  { %905 = vmatprep.subr.bf16.mxu1 %v2050_v35  ;;  %945 = vmatpush1.bf16.msra.mxu0 %v2049_v36  ;;  %v2206_v34 = vld [vmem:[#allocation7 + $0x44] ss:$8 sps:$4 sm:$0xff]   ;;  %v2126_v36 = vld [vmem:[#allocation5 + $0x148] ss:$16 sps:$4 sm:$0xff]   ;;  %v2215_v46 = vld [vmem:[#allocation7 + $0x74] ss:$8 sps:$4 sm:$0xff]  }
  0x6f   :  { %946 = vmatprep.subr.bf16.mxu0 %v2053_v37  ;;  %v2128_v35 = vld [vmem:[#allocation5 + $0x14c] ss:$16 sps:$4 sm:$0xff]   ;;  %v2204_v37 = vld [vmem:[#allocation7 + $0x40] ss:$8 sps:$4 sm:$0xff]  }
  0x70   :  { %v2218_v50 = vld [vmem:[#allocation7 + $0x84] ss:$8 sps:$4 sm:$0xff]  }
  0x71   :  { %906 = vmatpush1.bf16.msra.mxu1 %v2052_v38  ;;  %v2209_v38 = vld [vmem:[#allocation7 + $0x54] ss:$8 sps:$4 sm:$0xff]  }
  0x72   :  { %907 = vmatprep.subr.bf16.mxu1 %v2056_v39  ;;  %947 = vmatpush1.bf16.msra.mxu0 %v2055_v40  ;;  %v2131_v39 = vld [vmem:[#allocation5 + $0x16c] ss:$16 sps:$4 sm:$0xff]   ;;  %v2207_v40 = vld [vmem:[#allocation7 + $0x50] ss:$8 sps:$4 sm:$0xff]  }
  0x73   :  { %948 = vmatprep.subr.bf16.mxu0 %v2059_v41  ;;  %v2129_v41 = vld [vmem:[#allocation5 + $0x168] ss:$16 sps:$4 sm:$0xff]  }
  0x75   :  { %908 = vmatpush1.bf16.msra.mxu1 %v2058_v42  ;;  %v2212_v42 = vld [vmem:[#allocation7 + $0x64] ss:$8 sps:$4 sm:$0xff]  }
  0x76   :  { %909 = vmatprep.subr.bf16.mxu1 %v2062_v43  ;;  %949 = vmatpush1.bf16.msra.mxu0 %v2061_v44  ;;  %v2134_v43 = vld [vmem:[#allocation5 + $0x18c] ss:$16 sps:$4 sm:$0xff]   ;;  %v2210_v44 = vld [vmem:[#allocation7 + $0x60] ss:$8 sps:$4 sm:$0xff]  }
  0x77   :  { %950 = vmatprep.subr.bf16.mxu0 %v2065_v45  ;;  %v2132_v45 = vld [vmem:[#allocation5 + $0x188] ss:$16 sps:$4 sm:$0xff]  }
  0x79   :  { %910 = vmatpush1.bf16.msra.mxu1 %v2064_v47  ;;  %v2137_v47 = vld [vmem:[#allocation5 + $0x1ac] ss:$16 sps:$4 sm:$0xff]  }
  0x7a   :  { %911 = vmatprep.subr.bf16.mxu1 %v2068_v49  ;;  %951 = vmatpush1.bf16.msra.mxu0 %v2067_v51  ;;  %v2135_v49 = vld [vmem:[#allocation5 + $0x1a8] ss:$16 sps:$4 sm:$0xff]   ;;  %v2140_v51 = vld [vmem:[#allocation5 + $0x1cc] ss:$16 sps:$4 sm:$0xff]  }
  0x7b   :  { %952 = vmatprep.subr.bf16.mxu0 %v2071_v53  ;;  %v2216_v53 = vld [vmem:[#allocation7 + $0x80] ss:$8 sps:$4 sm:$0xff]  }
  0x7d   :  { %912 = vmatpush1.bf16.msra.mxu1 %v2070_v54  ;;  %v2138_v54 = vld [vmem:[#allocation5 + $0x1c8] ss:$16 sps:$4 sm:$0xff]  }
  0x7e   :  { %913 = vmatprep.subr.bf16.mxu1 %v2074_v55  ;;  %953 = vmatpush1.bf16.msra.mxu0 %v2073_v56  ;;  %v2221_v55 = vld [vmem:[#allocation7 + $0x94] ss:$8 sps:$4 sm:$0xff]  }
  0x7f   :  { %954 = vmatprep.subr.bf16.mxu0 %v2077_v57  ;;  %v2143_v56 = vld [vmem:[#allocation5 + $0x1ec] ss:$16 sps:$4 sm:$0xff]   ;;  %v2219_v57 = vld [vmem:[#allocation7 + $0x90] ss:$8 sps:$4 sm:$0xff]  }
  0x81   :  { %914 = vmatpush1.bf16.msra.mxu1 %v2076_v58  ;;  %v2141_v58 = vld [vmem:[#allocation5 + $0x1e8] ss:$16 sps:$4 sm:$0xff]  }
  0x82   :  { %915 = vmatprep.subr.bf16.mxu1 %v2080_v59  ;;  %955 = vmatpush1.bf16.msra.mxu0 %v2079_v60  ;;  %v2224_v59 = vld [vmem:[#allocation7 + $0xa4] ss:$8 sps:$4 sm:$0xff]  }
  0x83   :  { %956 = vmatprep.subr.bf16.mxu0 %v2083_v61  ;;  %v2146_v60 = vld [vmem:[#allocation5 + $0x20c] ss:$16 sps:$4 sm:$0xff]   ;;  %v2222_v61 = vld [vmem:[#allocation7 + $0xa0] ss:$8 sps:$4 sm:$0xff]  }
  0x85   :  { %916 = vmatpush1.bf16.msra.mxu1 %v2082_v62  ;;  %v2144_v62 = vld [vmem:[#allocation5 + $0x208] ss:$16 sps:$4 sm:$0xff]  }
  0x86   :  { %917 = vmatprep.subr.bf16.mxu1 %v2086_v63  ;;  %957 = vmatpush1.bf16.msra.mxu0 %v2085_v0  ;;  %v2149_v63 = vld [vmem:[#allocation5 + $0x22c] ss:$16 sps:$4 sm:$0xff]  }
  0x87   :  { %958 = vmatprep.subr.bf16.mxu0 %v2089_v1  ;;  %v2227_v0 = vld [vmem:[#allocation7 + $0xb4] ss:$8 sps:$4 sm:$0xff]   ;;  %v2225_v1 = vld [vmem:[#allocation7 + $0xb0] ss:$8 sps:$4 sm:$0xff]  }
  0x89   :  { %918 = vmatpush1.bf16.msra.mxu1 %v2088_v2  ;;  %v2147_v2 = vld [vmem:[#allocation5 + $0x228] ss:$16 sps:$4 sm:$0xff]  }
  0x8a   :  { %969 = vmatprep.subr.bf16.mxu1 %v2096_v3  ;;  %959 = vmatpush1.bf16.msra.mxu0 %v2093_v4  ;;  %v2230_v3 = vld [vmem:[#allocation7 + $0xc4] ss:$8 sps:$4 sm:$0xff]  }
  0x8b   :  { %1455 = vmatprep.subr.bf16.mxu0 %v2194_v21  ;;  %v2152_v4 = vld [vmem:[#allocation5 + $0x24c] ss:$16 sps:$4 sm:$0xff]   ;;  %v2165_v21 = vld [vmem:[#allocation5 + $0x2e8] ss:$16 sps:$4 sm:$0xff]  }
  0x8c   :  { %920 = vmatmul.mubr.bf16.vlgmr.msra.gmra.mrb[0].mxu1 %v2524_v5 }
  0x8d   :  { %970 = vmatpush1.bf16.msra.mxu1 %v2094_v6  ;;  %1001 = vmatprep.mubr.bf16.mxu1 %v1735_v48  ;;  %v2213_v48 = vld [vmem:[#allocation7 + $0x70] ss:$8 sps:$4 sm:$0xff]   ;;  %v2228_v6 = vld [vmem:[#allocation7 + $0xc0] ss:$8 sps:$4 sm:$0xff]  }
  0x8e   :  { %961 = vmatmul.mubr.bf16.vlgmr.msra.gmra.mrb[0].mxu0 %v2526_v7  ;;  %971 = vmatprep.subr.bf16.mxu1 %v2101_v8  ;;  %v2150_v8 = vld [vmem:[#allocation5 + $0x248] ss:$16 sps:$4 sm:$0xff]  }
  0x8f   :  { %1456 = vmatpush1.bf16.msra.mxu0 %v2192_v20  ;;  %v2239_v20 = vld [vmem:[#allocation7 + $0xf4] ss:$8 sps:$4 sm:$0xff]  }
  0x90   :  { %1457 = vmatprep.subr.bf16.mxu0 %v2197_v23  ;;  %v2170_v23 = vld [vmem:[#allocation5 + $0x30c] ss:$16 sps:$4 sm:$0xff]  }
  0x91   :  { %972 = vmatpush1.bf16.msra.mxu1 %v2099_v9  ;;  %v2233_v9 = vld [vmem:[#allocation7 + $0xd4] ss:$8 sps:$4 sm:$0xff]  }
  0x92   :  { %973 = vmatprep.subr.bf16.mxu1 %v2104_v10  ;;  %v2155_v10 = vld [vmem:[#allocation5 + $0x26c] ss:$16 sps:$4 sm:$0xff]  }
  0x93   :  { %1458 = vmatpush1.bf16.msra.mxu0 %v2195_v25  ;;  %v2173_v25 = vld [vmem:[#allocation5 + $0x32c] ss:$16 sps:$4 sm:$0xff]  }
  0x94   :  { %1459 = vmatprep.subr.bf16.mxu0 %v2200_v26  ;;  %v2242_v26 = vld [vmem:[#allocation7 + $0x104] ss:$8 sps:$4 sm:$0xff]  }
  0x95   :  { %974 = vmatpush1.bf16.msra.mxu1 %v2102_v11  ;;  %v2153_v11 = vld [vmem:[#allocation5 + $0x268] ss:$16 sps:$4 sm:$0xff]  }
  0x96   :  { %975 = vmatprep.subr.bf16.mxu1 %v2107_v12  ;;  %v2158_v12 = vld [vmem:[#allocation5 + $0x28c] ss:$16 sps:$4 sm:$0xff]  }
  0x97   :  { %1460 = vmatpush1.bf16.msra.mxu0 %v2198_v29  ;;  %v2174_v29 = vld [vmem:[#allocation5 + $0x348] ss:$16 sps:$4 sm:$0xff]  }
  0x98   :  { %1461 = vmatprep.subr.bf16.mxu0 %v2203_v30  ;;  %v2179_v30 = vld [vmem:[#allocation5 + $0x36c] ss:$16 sps:$4 sm:$0xff]  }
  0x99   :  { %976 = vmatpush1.bf16.msra.mxu1 %v2105_v13  ;;  %v2161_v13 = vld [vmem:[#allocation5 + $0x2ac] ss:$16 sps:$4 sm:$0xff]  }
  0x9a   :  { %977 = vmatprep.subr.bf16.mxu1 %v2110_v14  ;;  %v2159_v14 = vld [vmem:[#allocation5 + $0x2a8] ss:$16 sps:$4 sm:$0xff]  }
  0x9b   :  { %1462 = vmatpush1.bf16.msra.mxu0 %v2201_v33  ;;  %v2180_v33 = vld [vmem:[#allocation5 + $0x388] ss:$16 sps:$4 sm:$0xff]  }
  0x9c   :  { %1463 = vmatprep.subr.bf16.mxu0 %v2206_v34  ;;  %v2185_v34 = vld [vmem:[#allocation5 + $0x3ac] ss:$16 sps:$4 sm:$0xff]  }
  0x9d   :  { %978 = vmatpush1.bf16.msra.mxu1 %v2108_v15  ;;  %v2164_v15 = vld [vmem:[#allocation5 + $0x2cc] ss:$16 sps:$4 sm:$0xff]  }
  0x9e   :  { %979 = vmatprep.subr.bf16.mxu1 %v2113_v16  ;;  %v2236_v16 = vld [vmem:[#allocation7 + $0xe4] ss:$8 sps:$4 sm:$0xff]  }
  0x9f   :  { %1464 = vmatpush1.bf16.msra.mxu0 %v2204_v37  ;;  %v2186_v37 = vld [vmem:[#allocation5 + $0x3c8] ss:$16 sps:$4 sm:$0xff]  }
  0xa0   :  { %1465 = vmatprep.subr.bf16.mxu0 %v2209_v38  ;;  %v2191_v38 = vld [vmem:[#allocation5 + $0x3ec] ss:$16 sps:$4 sm:$0xff]  }
  0xa1   :  { %980 = vmatpush1.bf16.msra.mxu1 %v2111_v17  ;;  %v2162_v17 = vld [vmem:[#allocation5 + $0x2c8] ss:$16 sps:$4 sm:$0xff]  }
  0xa2   :  { %981 = vmatprep.subr.bf16.mxu1 %v2116_v18  ;;  %v2234_v18 = vld [vmem:[#allocation7 + $0xe0] ss:$8 sps:$4 sm:$0xff]  }
  0xa3   :  { %1466 = vmatpush1.bf16.msra.mxu0 %v2207_v40  ;;  %v213_v40 = vlaneseq }
  0xa4   :  { %1467 = vmatprep.subr.bf16.mxu0 %v2212_v42 }
  0xa5   :  { %982 = vmatpush1.bf16.msra.mxu1 %v2114_v19  ;;  %v2167_v19 = vld [vmem:[#allocation5 + $0x2ec] ss:$16 sps:$4 sm:$0xff]  }
  0xa6   :  { %983 = vmatprep.subr.bf16.mxu1 %v2119_v22  ;;  %v2237_v22 = vld [vmem:[#allocation7 + $0xf0] ss:$8 sps:$4 sm:$0xff]  }
  0xa7   :  { %1468 = vmatpush1.bf16.msra.mxu0 %v2210_v44 }
  0xa8   :  { %1469 = vmatprep.subr.bf16.mxu0 %v2215_v46 }
  0xa9   :  { %984 = vmatpush1.bf16.msra.mxu1 %v2117_v24  ;;  %v2168_v24 = vld [vmem:[#allocation5 + $0x308] ss:$16 sps:$4 sm:$0xff]  }
  0xaa   :  { %985 = vmatprep.subr.bf16.mxu1 %v2122_v27  ;;  %v2171_v27 = vld [vmem:[#allocation5 + $0x328] ss:$16 sps:$4 sm:$0xff]  }
  0xab   :  { %1470 = vmatpush1.bf16.msra.mxu0 %v2213_v48 }
  0xac   :  { %1471 = vmatprep.subr.bf16.mxu0 %v2218_v50 }
  0xad   :  { %986 = vmatpush1.bf16.msra.mxu1 %v2120_v28  ;;  %v2176_v28 = vld [vmem:[#allocation5 + $0x34c] ss:$16 sps:$4 sm:$0xff]  }
  0xae   :  { %987 = vmatprep.subr.bf16.mxu1 %v2125_v31  ;;  %v2177_v31 = vld [vmem:[#allocation5 + $0x368] ss:$16 sps:$4 sm:$0xff]  }
  0xaf   :  { %1472 = vmatpush1.bf16.msra.mxu0 %v2216_v53 }
  0xb0   :  { %1473 = vmatprep.subr.bf16.mxu0 %v2221_v55 }
  0xb1   :  { %988 = vmatpush1.bf16.msra.mxu1 %v2123_v32  ;;  %v2182_v32 = vld [vmem:[#allocation5 + $0x38c] ss:$16 sps:$4 sm:$0xff]  }
  0xb2   :  { %989 = vmatprep.subr.bf16.mxu1 %v2128_v35  ;;  %v2183_v35 = vld [vmem:[#allocation5 + $0x3a8] ss:$16 sps:$4 sm:$0xff]  }
  0xb3   :  { %1474 = vmatpush1.bf16.msra.mxu0 %v2219_v57 }
  0xb4   :  { %1475 = vmatprep.subr.bf16.mxu0 %v2224_v59 }
  0xb5   :  { %990 = vmatpush1.bf16.msra.mxu1 %v2126_v36  ;;  %v2188_v36 = vld [vmem:[#allocation5 + $0x3cc] ss:$16 sps:$4 sm:$0xff]  }
  0xb6   :  { %991 = vmatprep.subr.bf16.mxu1 %v2131_v39  ;;  %v2189_v39 = vld [vmem:[#allocation5 + $0x3e8] ss:$16 sps:$4 sm:$0xff]  }
  0xb7   :  { %1476 = vmatpush1.bf16.msra.mxu0 %v2222_v61 }
  0xb8   :  { %1477 = vmatprep.subr.bf16.mxu0 %v2227_v0  ;;  %v2245_v0 = vld [vmem:[#allocation7 + $0x114] ss:$8 sps:$4 sm:$0xff]  }
  0xb9   :  { %992 = vmatpush1.bf16.msra.mxu1 %v2129_v41  ;;  %v2533_v41 = vshrl.u32 %v213_v40, 7  ;;  %v2287_v40 = vld [vmem:[#allocation7 + $0x1f4] ss:$8 sps:$4 sm:$0xff]  }
  0xba   :  { %993 = vmatprep.subr.bf16.mxu1 %v2134_v43  ;;  %v2539_v43 = vld [vmem:[%s2576_s2] sm:$0xf] }
  0xbb   :  { %1478 = vmatpush1.bf16.msra.mxu0 %v2225_v1  ;;  %v215_v42 = vsub.s32 0, %v2533_v41  ;;  %v219_v44 = vsub.s32 1, %v2533_v41  ;;  %v2288_v1 = vld [vmem:[#allocation8 + $0x40] sm:$0xff]  }
  0xbc   :  { %1479 = vmatprep.subr.bf16.mxu0 %v2230_v3  ;;  %v2290_v3 = vld [vmem:[#allocation8 + $0x48] sm:$0xff]  }
  0xbd   :  { %994 = vmatpush1.bf16.msra.mxu1 %v2132_v45  ;;  %v216_v45 = vrot.slane %v2539_v43, %v215_v42 }
  0xbe   :  { %995 = vmatprep.subr.bf16.mxu1 %v2137_v47 }
  0xbf   :  { %1480 = vmatpush1.bf16.msra.mxu0 %v2228_v6  ;;  %v2291_v6 = vld [vmem:[#allocation8 + $0x8] sm:$0xff]  }
  0xc0   :  { %1481 = vmatprep.subr.bf16.mxu0 %v2233_v9  ;;  %v2292_v9 = vld [vmem:[#allocation8 + $0x50] sm:$0xff]  }
  0xc1   :  { %996 = vmatpush1.bf16.msra.mxu1 %v2135_v49 }
  0xc2   :  { %997 = vmatprep.subr.bf16.mxu1 %v2140_v51 }
  0xc5   :  { %998 = vmatpush1.bf16.msra.mxu1 %v2138_v54 }
  0xc6   :  { %999 = vmatprep.subr.bf16.mxu1 %v2143_v56 }
  0xc9   :  { %1000 = vmatpush1.bf16.msra.mxu1 %v2141_v58 }
  0xca   :  { %1010 = vmatprep.subr.bf16.mxu1 %v2146_v60 }
  0xcc   :  { %1002 = vmatmul.mubr.bf16.vlgmr.msra.gmra.mrb[4].mxu1 %v2524_v5  ;;  %v2231_v5 = vld [vmem:[#allocation7 + $0xd0] ss:$8 sps:$4 sm:$0xff]  }
  0xcd   :  { %1011 = vmatpush1.bf16.msra.mxu1 %v2144_v62  ;;  %1042 = vmatprep.mubr.bf16.mxu1 %v2521_v52  ;;  %v2156_v52 = vld [vmem:[#allocation5 + $0x288] ss:$16 sps:$4 sm:$0xff]  }
  0xce   :  { %1012 = vmatprep.subr.bf16.mxu1 %v2149_v63  ;;  %1482 = vmatpush1.bf16.msra.mxu0 %v2231_v5  ;;  %v2240_v63 = vld [vmem:[#allocation7 + $0x100] ss:$8 sps:$4 sm:$0xff]   ;;  %v2293_v5 = vld [vmem:[#allocation8 + $0x10] sm:$0xff]  }
  0xcf   :  { %1483 = vmatprep.subr.bf16.mxu0 %v2236_v16  ;;  %v2252_v16 = vld [vmem:[#allocation7 + $0x140] ss:$8 sps:$4 sm:$0xff]  }
  0xd1   :  { %1013 = vmatpush1.bf16.msra.mxu1 %v2147_v2  ;;  %v2289_v2 = vld [vmem:[#allocation8] sm:$0xff]  }
  0xd2   :  { %1014 = vmatprep.subr.bf16.mxu1 %v2152_v4  ;;  %1484 = vmatpush1.bf16.msra.mxu0 %v2234_v18  ;;  %v2243_v4 = vld [vmem:[#allocation7 + $0x110] ss:$8 sps:$4 sm:$0xff]   ;;  %v2257_v18 = vld [vmem:[#allocation7 + $0x154] ss:$8 sps:$4 sm:$0xff]  }
  0xd3   :  { %1485 = vmatprep.subr.bf16.mxu0 %v2239_v20  ;;  %v2255_v20 = vld [vmem:[#allocation7 + $0x150] ss:$8 sps:$4 sm:$0xff]  }
  0xd5   :  { %1015 = vmatpush1.bf16.msra.mxu1 %v2150_v8  ;;  %v2248_v8 = vld [vmem:[#allocation7 + $0x124] ss:$8 sps:$4 sm:$0xff]  }
  0xd6   :  { %1016 = vmatprep.subr.bf16.mxu1 %v2155_v10  ;;  %1486 = vmatpush1.bf16.msra.mxu0 %v2237_v22  ;;  %v2246_v10 = vld [vmem:[#allocation7 + $0x120] ss:$8 sps:$4 sm:$0xff]   ;;  %v2260_v22 = vld [vmem:[#allocation7 + $0x164] ss:$8 sps:$4 sm:$0xff]  }
  0xd7   :  { %1496 = vmatprep.subr.bf16.mxu0 %v2242_v26  ;;  %v2266_v26 = vld [vmem:[#allocation7 + $0x184] ss:$8 sps:$4 sm:$0xff]  }
  0xd9   :  { %1017 = vmatpush1.bf16.msra.mxu1 %v2153_v11  ;;  %v2251_v11 = vld [vmem:[#allocation7 + $0x134] ss:$8 sps:$4 sm:$0xff]  }
  0xda   :  { %1018 = vmatprep.subr.bf16.mxu1 %v2158_v12  ;;  %v2294_v12 = vld [vmem:[#allocation8 + $0x58] sm:$0xff]  }
  0xdd   :  { %1019 = vmatpush1.bf16.msra.mxu1 %v2156_v52  ;;  %v2249_v52 = vld [vmem:[#allocation7 + $0x130] ss:$8 sps:$4 sm:$0xff]  }
  0xde   :  { %1020 = vmatprep.subr.bf16.mxu1 %v2161_v13  ;;  %v2295_v13 = vld [vmem:[#allocation8 + $0x18] sm:$0xff]  }
  0xe1   :  { %1021 = vmatpush1.bf16.msra.mxu1 %v2159_v14  ;;  %v2254_v14 = vld [vmem:[#allocation7 + $0x144] ss:$8 sps:$4 sm:$0xff]  }
  0xe2   :  { %1022 = vmatprep.subr.bf16.mxu1 %v2164_v15  ;;  %v2296_v15 = vld [vmem:[#allocation8 + $0x60] sm:$0xff]  }
  0xe5   :  { %1023 = vmatpush1.bf16.msra.mxu1 %v2162_v17  ;;  %v2297_v17 = vld [vmem:[#allocation8 + $0x20] sm:$0xff]  }
  0xe6   :  { %1024 = vmatprep.subr.bf16.mxu1 %v2167_v19  ;;  %v2298_v19 = vld [vmem:[#allocation8 + $0x68] sm:$0xff]  }
  0xe9   :  { %1025 = vmatpush1.bf16.msra.mxu1 %v2165_v21  ;;  %v2299_v21 = vld [vmem:[#allocation8 + $0x28] sm:$0xff]  }
  0xea   :  { %1026 = vmatprep.subr.bf16.mxu1 %v2170_v23  ;;  %v2258_v23 = vld [vmem:[#allocation7 + $0x160] ss:$8 sps:$4 sm:$0xff]  }
  0xed   :  { %1027 = vmatpush1.bf16.msra.mxu1 %v2168_v24  ;;  %v2263_v24 = vld [vmem:[#allocation7 + $0x174] ss:$8 sps:$4 sm:$0xff]  }
  0xee   :  { %1028 = vmatprep.subr.bf16.mxu1 %v2173_v25  ;;  %v2261_v25 = vld [vmem:[#allocation7 + $0x170] ss:$8 sps:$4 sm:$0xff]  }
  0xf1   :  { %1029 = vmatpush1.bf16.msra.mxu1 %v2171_v27  ;;  %v2264_v27 = vld [vmem:[#allocation7 + $0x180] ss:$8 sps:$4 sm:$0xff]  }
  0xf2   :  { %1030 = vmatprep.subr.bf16.mxu1 %v2176_v28  ;;  %v2269_v28 = vld [vmem:[#allocation7 + $0x194] ss:$8 sps:$4 sm:$0xff]  }
  0xf5   :  { %1031 = vmatpush1.bf16.msra.mxu1 %v2174_v29  ;;  %v2267_v29 = vld [vmem:[#allocation7 + $0x190] ss:$8 sps:$4 sm:$0xff]  }
  0xf6   :  { %1032 = vmatprep.subr.bf16.mxu1 %v2179_v30  ;;  %v2272_v30 = vld [vmem:[#allocation7 + $0x1a4] ss:$8 sps:$4 sm:$0xff]  }
  0xf9   :  { %1033 = vmatpush1.bf16.msra.mxu1 %v2177_v31  ;;  %v2270_v31 = vld [vmem:[#allocation7 + $0x1a0] ss:$8 sps:$4 sm:$0xff]  }
  0xfa   :  { %1034 = vmatprep.subr.bf16.mxu1 %v2182_v32  ;;  %v2275_v32 = vld [vmem:[#allocation7 + $0x1b4] ss:$8 sps:$4 sm:$0xff]  }
  0xfd   :  { %1035 = vmatpush1.bf16.msra.mxu1 %v2180_v33  ;;  %v2273_v33 = vld [vmem:[#allocation7 + $0x1b0] ss:$8 sps:$4 sm:$0xff]  }
  0xfe   :  { %1036 = vmatprep.subr.bf16.mxu1 %v2185_v34  ;;  %v2278_v34 = vld [vmem:[#allocation7 + $0x1c4] ss:$8 sps:$4 sm:$0xff]  }
 0x101   :  { %1037 = vmatpush1.bf16.msra.mxu1 %v2183_v35  ;;  %v2276_v35 = vld [vmem:[#allocation7 + $0x1c0] ss:$8 sps:$4 sm:$0xff]  }
 0x102   :  { %1038 = vmatprep.subr.bf16.mxu1 %v2188_v36  ;;  %v2281_v36 = vld [vmem:[#allocation7 + $0x1d4] ss:$8 sps:$4 sm:$0xff]  }
 0x105   :  { %1039 = vmatpush1.bf16.msra.mxu1 %v2186_v37  ;;  %v2279_v37 = vld [vmem:[#allocation7 + $0x1d0] ss:$8 sps:$4 sm:$0xff]  }
 0x106   :  { %1040 = vmatprep.subr.bf16.mxu1 %v2191_v38  ;;  %v2284_v38 = vld [vmem:[#allocation7 + $0x1e4] ss:$8 sps:$4 sm:$0xff]  }
 0x109   :  { %1041 = vmatpush1.bf16.msra.mxu1 %v2189_v39  ;;  %v2282_v39 = vld [vmem:[#allocation7 + $0x1e0] ss:$8 sps:$4 sm:$0xff]  }
 0x10a   :  { %1947 = vmatprep.subr.bf16.mxu1 %v2288_v1 }
 0x10c   :  { %1043 = vmatmul.mubr.bf16.vlgmr.msra.gmra.mrb[4].mxu1 %v2526_v7  ;;  %v220_v7 = vrot.slane %v2539_v43, %v219_v44 }
 0x10d   :  { %1948 = vmatpush3.bf16.msra.mxu1 %v2289_v2 }
 0x10e   :  { %1949 = vmatprep.subr.bf16.mxu1 %v2290_v3 }
 0x111   :  { %1950 = vmatpush3.bf16.msra.mxu1 %v2291_v6 }
 0x112   :  { %1951 = vmatprep.subr.bf16.mxu1 %v2292_v9 }
 0x115   :  { %1952 = vmatpush3.bf16.msra.mxu1 %v2293_v5 }
 0x116   :  { %1953 = vmatprep.subr.bf16.mxu1 %v2294_v12 }
 0x119   :  { %1954 = vmatpush3.bf16.msra.mxu1 %v2295_v13 }
 0x11a   :  { %1955 = vmatprep.subr.bf16.mxu1 %v2296_v15 }
 0x11d   :  { %1956 = vmatpush3.bf16.msra.mxu1 %v2297_v17 }
 0x11e   :  { %1957 = vmatprep.subr.bf16.mxu1 %v2298_v19 }
 0x121   :  { %1958 = vmatpush3.bf16.msra.mxu1 %v2299_v21 }
 0x15f   :  { %v921_v46 = vpop.f32.mrb[0].mxu1 }
 0x160   :  { %v922_v47 = vadd.f32 %v921_v46, %v216_v45  ;;  %v923_v48 = vpop.f32.mrb[1].mxu1  ;;  %v2285_v45 = vld [vmem:[#allocation7 + $0x1f0] ss:$8 sps:$4 sm:$0xff]   ;;  %v227_v46 = vsub.s32 3, %v2533_v41 }
 0x161   :  { %v924_v49 = vadd.f32 %v923_v48, %v220_v7  ;;  %v925_v50 = vpop.f32.mrb[2].mxu1  ;;  %v962_v51 = vpop.f32.mrb[0].mxu0  ;;  %v223_v7 = vsub.s32 2, %v2533_v41 }
 0x162   :  { %v963_v53 = vadd.f32 %v962_v51, %v922_v47  ;;  %v926_v54 = vpop.f32.mrb[3].mxu1  ;;  %v964_v55 = vpop.f32.mrb[1].mxu0  ;;  %v228_v48 = vrot.slane %v2539_v43, %v227_v46 }
 0x163   :  { %v965_v56 = vadd.f32 %v964_v55, %v924_v49  ;;  %v966_v57 = vpop.f32.mrb[2].mxu0  ;;  %v224_v47 = vrot.slane %v2539_v43, %v223_v7  ;;  %v1123_v43 = vld [vmem:[%s2578_s4] sm:$0x3] }
 0x164   :  { %v1051_v58 = vmax.f32 %v963_v53, 0.0  ;;  %v967_v59 = vpop.f32.mrb[3].mxu0  ;;  %v1132_v1 = vrot.slane %v1123_v43, %v219_v44 }
 0x165   :  { %v1052_v60 = vmax.f32 %v965_v56, 0.0 }
 0x166   :  { %v1055_v61 = vpack.c.bf16 %v1051_v58, %v1051_v58 }
 0x167   :  { %v1056_v62 = vpack.c.bf16 %v1052_v60, %v1052_v60  ;;  %v2300_v60 = vld [vmem:[#allocation8 + $0x70] sm:$0xff]  }
 0x168   :  { %1959 = vmatprep.subr.bf16.mxu1 %v2300_v60 }
 0x169   :  { %1487 = vmatprep.mubr.bf16.mxu0 %v1056_v62  ;;  %v2302_v62 = vld [vmem:[#allocation8 + $0x78] sm:$0xff]  }
 0x16a   :  { %1488 = vmatmul.mubr.bf16.vlgmr.msra.gmra.mrb[4].mxu0 %v1055_v61  ;;  %v2301_v61 = vld [vmem:[#allocation8 + $0x30] sm:$0xff]  }
 0x16b   :  { %1497 = vmatpush1.bf16.msra.mxu0 %v2240_v63  ;;  %1960 = vmatpush3.bf16.msra.mxu1 %v2301_v61  ;;  %v2303_v63 = vld [vmem:[#allocation8 + $0x38] sm:$0xff]  }
 0x16c   :  { %1498 = vmatprep.subr.bf16.mxu0 %v2245_v0  ;;  %1961 = vmatprep.subr.bf16.mxu1 %v2302_v62  ;;  %v1128_v0 = vrot.slane %v1123_v43, %v215_v42  ;;  %v1930_v42 = vld [vmem:[%s2580_s6] ss:$0 sm:$0xff] }
 0x16f   :  { %1499 = vmatpush1.bf16.msra.mxu0 %v2243_v4  ;;  %1962 = vmatpush3.bf16.msra.mxu1 %v2303_v63 }
 0x170   :  { %1500 = vmatprep.subr.bf16.mxu0 %v2248_v8 }
 0x173   :  { %1501 = vmatpush1.bf16.msra.mxu0 %v2246_v10 }
 0x174   :  { %1502 = vmatprep.subr.bf16.mxu0 %v2251_v11 }
 0x177   :  { %1503 = vmatpush1.bf16.msra.mxu0 %v2249_v52 }
 0x178   :  { %1504 = vmatprep.subr.bf16.mxu0 %v2254_v14 }
 0x17b   :  { %1505 = vmatpush1.bf16.msra.mxu0 %v2252_v16 }
 0x17c   :  { %1506 = vmatprep.subr.bf16.mxu0 %v2257_v18 }
 0x17f   :  { %1507 = vmatpush1.bf16.msra.mxu0 %v2255_v20 }
 0x180   :  { %1508 = vmatprep.subr.bf16.mxu0 %v2260_v22 }
 0x183   :  { %1509 = vmatpush1.bf16.msra.mxu0 %v2258_v23 }
 0x184   :  { %1510 = vmatprep.subr.bf16.mxu0 %v2263_v24 }
 0x187   :  { %1511 = vmatpush1.bf16.msra.mxu0 %v2261_v25 }
 0x188   :  { %1512 = vmatprep.subr.bf16.mxu0 %v2266_v26 }
 0x18b   :  { %1513 = vmatpush1.bf16.msra.mxu0 %v2264_v27 }
 0x18c   :  { %1514 = vmatprep.subr.bf16.mxu0 %v2269_v28 }
 0x18f   :  { %1515 = vmatpush1.bf16.msra.mxu0 %v2267_v29 }
 0x190   :  { %1516 = vmatprep.subr.bf16.mxu0 %v2272_v30 }
 0x193   :  { %1517 = vmatpush1.bf16.msra.mxu0 %v2270_v31 }
 0x194   :  { %1518 = vmatprep.subr.bf16.mxu0 %v2275_v32 }
 0x197   :  { %1519 = vmatpush1.bf16.msra.mxu0 %v2273_v33 }
 0x198   :  { %1520 = vmatprep.subr.bf16.mxu0 %v2278_v34 }
 0x19b   :  { %1521 = vmatpush1.bf16.msra.mxu0 %v2276_v35 }
 0x19c   :  { %1522 = vmatprep.subr.bf16.mxu0 %v2281_v36 }
 0x19f   :  { %1523 = vmatpush1.bf16.msra.mxu0 %v2279_v37 }
 0x1a0   :  { %1524 = vmatprep.subr.bf16.mxu0 %v2284_v38 }
 0x1a3   :  { %1525 = vmatpush1.bf16.msra.mxu0 %v2282_v39 }
 0x1a4   :  { %1526 = vmatprep.subr.bf16.mxu0 %v2287_v40 }
 0x1a7   :  { %1527 = vmatpush1.bf16.msra.mxu0 %v2285_v45 }
 0x1df   :  { %v1044_v49 = vpop.f32.mrb[4].mxu1 }
 0x1e0   :  { %v1973_v50 = vadd.f32 %v1044_v49, %v224_v47  ;;  %v1046_v51 = vpop.f32.mrb[5].mxu1 }
 0x1e1   :  { %v1974_v53 = vadd.f32 %v1046_v51, %v228_v48  ;;  %v1048_v54 = vpop.f32.mrb[6].mxu1 }
 0x1e2   :  { %v1053_v55 = vmax.f32 %v1973_v50, 0.0  ;;  %v1049_v56 = vpop.f32.mrb[7].mxu1 }
 0x1e3   :  { %v1054_v57 = vmax.f32 %v1974_v53, 0.0 }
 0x1e4   :  { %v1057_v59 = vpack.c.bf16 %v1053_v55, %v1053_v55 }
 0x1e5   :  { %v1058_v58 = vpack.c.bf16 %v1054_v57, %v1054_v57 }
 0x1e7   :  { %1528 = vmatprep.mubr.bf16.mxu0 %v1058_v58 }
 0x1e8   :  { %1529 = vmatmul.mubr.bf16.vlgmr.msra.gmra.mrb[4].mxu0 %v1057_v59 }
 0x2bb   :  { %v1530_v2 = vpop.f32.mrb[4].mxu0 }
 0x2bc   :  { %v1975_v3 = vadd.f32 %v1530_v2, %v1128_v0  ;;  %v1532_v4 = vpop.f32.mrb[5].mxu0 }
 0x2bd   :  { %v1976_v6 = vadd.f32 %v1532_v4, %v1132_v1  ;;  %v1534_v8 = vpop.f32.mrb[6].mxu0 }
 0x2be   :  { %v1537_v9 = vmax.f32 %v1975_v3, 0.0  ;;  %v1535_v10 = vpop.f32.mrb[7].mxu0 }
 0x2bf   :  { %v1538_v5 = vmax.f32 %v1976_v6, 0.0 }
 0x2c0   :  { %v1539_v12 = vpack.c.bf16 %v1537_v9, %v1537_v9 }
 0x2c1   :  { %v1540_v11 = vpack.c.bf16 %v1538_v5, %v1538_v5 }
 0x2c3   :  { %1708 = vmatprep.mubr.bf16.mxu1 %v1540_v11 }
 0x2c4   :  { %1709 = vmatmul.mubr.bf16.vlgmr.msra.gmra.mrb[8].mxu1 %v1539_v12 }
 0x397   :  { %v1963_v52 = vpop.f32.mrb[8].mxu1 }
 0x398   :  { %v1964_v13 = vpop.f32.mrb[9].mxu1 }
 0x399   :  { %v1965_v41 = vadd.f32 %v1964_v13, %v1963_v52  ;;  %v1966_v44 = vpop.f32.mrb[10].mxu1 }
 0x39a   :  { %v1967_v14 = vpop.f32.mrb[11].mxu1 }
 0x39b   :  { %v1711_v15 = vadd.f32 %v1965_v41, %v1930_v42 }
 0x39d   :  { %1716 = vst [vmem:[#allocation10] sm:$0xff] %v1711_v15 }
 0x39e   :  { %2403 = shalt.err (!%p2400_p8)
}
 0x39f   :  { %s2404_s6 = scalar_lea.hbm %s2581_s7, 128 }
 0x3a0   :  { %p2405_p9 = scmp.ne.s32.totalorder %s2581_s7, %s2404_s6  ;;  %p2408_p10 = scmp.lt.u32.totalorder %s2404_s6, %s2581_s7 }
 0x3a2   :  { %p2410_p11 = pnand %p2408_p10, %p2405_p9 }
 0x3a4   :  { %2413 = shalt.err (!%p2410_p11)
}
 0x3a5   :  { %1726 = dma.vmem_to_hbm [thread:$0]  %s1724_s9, 128, %s2581_s7, [#allocation4]  }
 0x3a6   :  { %2420 = dma.done.wait [#allocation4], 128  }
 0x3a7   :  { %2421 = vsyncadd [#allocation4], 4294967168 }
 0x3a8   :  { %1730 = vsyncpa [#allocation3], 1 }
 0x3a9   :  { %1731 = vsyncpa [#allocation6], 1 }
 0x3aa   :  { %1732 = vsyncpa [#allocation9], 1 }
 0x3ab   :  { %1733 = vsyncpa [#allocation4], 1 }

</bundles_post_ra>
